<compile_context>
chip_gen: v5e
topology: v5e:2x2
jax: 0.10.0
libtpu: 0.0.40
codegen_flags: <defaults>
</compile_context>

<pallas_src>
import functools

import jax
import jax.numpy as jnp
from jax import lax
from jax.experimental import pallas as pl
from jax.experimental.pallas import tpu as pltpu


def _round_up(x, m):
    return ((x + m - 1) // m) * m


def _pad_to(x, shape):
    """Zero-pad `x` up to `shape` (no-op / no copy when already that shape)."""
    shape = tuple(shape)
    if x.shape == shape:
        return x
    out = jnp.zeros(shape, x.dtype)
    return out.at[tuple(slice(0, s) for s in x.shape)].set(x)


def _pad_gate_cols(w, H, Hp):
    """Pad a (K, 4H) gate-stacked matrix to (K, 4Hp), each gate at [g*Hp:g*Hp+H]."""
    if H == Hp:
        return w
    K = w.shape[0]
    out = jnp.zeros((K, 4 * Hp), w.dtype)
    for g in range(4):
        out = out.at[:, g * Hp:g * Hp + H].set(w[:, g * H:(g + 1) * H])
    return out


@functools.lru_cache(maxsize=1)
def _vmem_limit_bytes():
    """~75% of physical VMEM, capped at 96 MiB (v5e/v6e: 96 MiB, v7x: 48 MiB)."""
    cap = 64 * 1024 * 1024
    try:
        cap = int(pltpu.get_tpu_info().vmem_capacity_bytes)
    except Exception:
        pass
    return int(min(cap * 3 // 4, 96 * 1024 * 1024))


def _choose_row_tiling(n, target):
    """Row tile (mult of 8) + padded row count; prefers a tile dividing the
    8-rounded row count (zero pad & zero output slice) unless it would be tiny."""
    nr = _round_up(n, 8)
    cap = min(nr, max(8, (target // 8) * 8))
    c = cap
    best = 8
    while c >= 8:
        if nr % c == 0:
            best = c
            break
        c -= 8
    if best >= 64 or best == nr:
        return best, nr
    return cap, _round_up(nr, cap)


def _largest_dividing_tile(dim, target, unit):
    """Largest multiple of `unit` <= target that divides `dim` (dim % unit == 0)."""
    t = min(dim, max(unit, (target // unit) * unit))
    while dim % t != 0:
        t -= unit
    return t


# ----------------------------------------------------------------------------
# Tiled matmul + bias kernel: (N, K) @ (K, M) + b -> (N, M), bf16 MXU, f32 acc.
# Used for (a) the hoisted LSTM input projection and (b) the logits layer.
# ----------------------------------------------------------------------------
def _matmul_bias_kernel(x_ref, w_ref, b_ref, o_ref, acc_ref):
    k = pl.program_id(2)

    @pl.when(k == 0)
    def _():
        acc_ref[...] = jnp.zeros_like(acc_ref)

    acc_ref[...] += jnp.dot(x_ref[...].astype(jnp.bfloat16),
                            w_ref[...].astype(jnp.bfloat16),
                            preferred_element_type=jnp.float32)

    @pl.when(k == pl.num_programs(2) - 1)
    def _():
        o_ref[...] = (acc_ref[...] + b_ref[...]).astype(o_ref.dtype)


def matmul_bias(x, w_t, b, *, tn_target=512, tm_target=512, tk_target=512,
                vmem_limit=None):
    """x: (N, K) f32, w_t: (K, M) bf16 (pre-padded, K%128==0, M%128==0),
    b: (1, M) f32 -> (N, M) f32."""
    N, K = x.shape
    Kw, M = w_t.shape
    assert Kw == K and K % 128 == 0 and M % 128 == 0, (x.shape, w_t.shape)

    tn, Np = _choose_row_tiling(N, tn_target)
    tm = _largest_dividing_tile(M, tm_target, 128)
    tk = _largest_dividing_tile(K, tk_target, 128)
    if Np != N:
        x = _pad_to(x, (Np, K))
    if vmem_limit is None:
        vmem_limit = _vmem_limit_bytes()

    out = pl.pallas_call(
        _matmul_bias_kernel,
        out_shape=jax.ShapeDtypeStruct((Np, M), jnp.float32),
        grid_spec=pltpu.PrefetchScalarGridSpec(
            num_scalar_prefetch=0,
            grid=(Np // tn, M // tm, K // tk),
            in_specs=[
                pl.BlockSpec((tn, tk), lambda i, j, k: (i, k)),
                pl.BlockSpec((tk, tm), lambda i, j, k: (k, j)),
                pl.BlockSpec((1, tm), lambda i, j, k: (0, j)),
            ],
            out_specs=pl.BlockSpec((tn, tm), lambda i, j, k: (i, j)),
            scratch_shapes=[pltpu.VMEM((tn, tm), jnp.float32)],
        ),
        compiler_params=pltpu.CompilerParams(
            dimension_semantics=("parallel", "parallel", "arbitrary"),
            vmem_limit_bytes=vmem_limit,
        ),
    )(x, w_t, b)
    if Np != N:
        out = out[:N]
    return out


# ----------------------------------------------------------------------------
# LSTM recurrence kernel: grid over time BLOCKS, statically-unrolled in-kernel
# fori_loop over the timesteps of each block.  Input gates gx = X @ W_ih^T + b
# are precomputed.  Gate order follows PyTorch nn.LSTM: i, f, g, o.  All gate
# slices are 128-lane aligned (H padded to Hp).
# ----------------------------------------------------------------------------
def _lstm_recurrence_kernel(gx_ref,     # (Tb, Bp, 4Hp) precomputed input gates
                            h0_ref,     # (Bp, Hp)
                            c0_ref,     # (Bp, Hp)
                            whh_ref,    # (Hp, 4Hp) = W_hh^T (f32)
                            hseq_ref,   # (Tb, Bp, Hp) hidden sequence block
                            hn_ref,     # (Bp, Hp) final hidden
                            cn_ref,     # (Bp, Hp) final cell
                            h_sc,       # scratch (Bp, Hp) f32
                            c_sc,       # scratch (Bp, Hp) f32
                            *, tb_steps, last_steps):
    t_blk = pl.program_id(0)
    n_blk = pl.num_programs(0)
    Hp = h_sc.shape[1]

    @pl.when(t_blk == 0)
    def _():
        h_sc[...] = h0_ref[...]
        c_sc[...] = c0_ref[...]

    def step(t, carry):
        # Single in-loop MXU matmul: h @ W_hh^T, then add precomputed x-gates.
        gates = gx_ref[t] + jnp.dot(h_sc[...], whh_ref[...],
                                    preferred_element_type=jnp.float32)
        i_g = jax.nn.sigmoid(gates[:, 0 * Hp:1 * Hp])
        f_g = jax.nn.sigmoid(gates[:, 1 * Hp:2 * Hp])
        g_g = jnp.tanh(gates[:, 2 * Hp:3 * Hp])
        o_g = jax.nn.sigmoid(gates[:, 3 * Hp:4 * Hp])
        c_new = f_g * c_sc[...] + i_g * g_g
        h_new = o_g * jnp.tanh(c_new)
        h_sc[...] = h_new
        c_sc[...] = c_new
        hseq_ref[t] = h_new
        return carry

    def run(n_steps):
        lax.fori_loop(0, n_steps, step, 0, unroll=min(n_steps, 8))

    if last_steps == tb_steps:
        # Every block is full: single statically-unrolled path.
        run(tb_steps)
    else:
        @pl.when(t_blk != n_blk - 1)
        def _():
            run(tb_steps)

        @pl.when(t_blk == n_blk - 1)
        def _():
            # Ragged tail: keep the padded hseq rows deterministic, then run the
            # statically-known remainder (still unrolled).
            hseq_ref[...] = jnp.zeros_like(hseq_ref)
            run(last_steps)

    # Final states written once, at the last grid step only.
    @pl.when(t_blk == n_blk - 1)
    def _():
        hn_ref[...] = h_sc[...]
        cn_ref[...] = c_sc[...]


def _choose_time_block(T, Bp, Hp, budget_bytes, cap=128):
    """Largest Tb such that double-buffered gx/hseq blocks + W_hh + scratch fit."""
    fixed = 2 * (Hp * 4 * Hp * 4) + 10 * (Bp * Hp * 4)
    per_t = 2 * Bp * (4 * Hp + Hp) * 4
    tb = (budget_bytes - fixed) // per_t
    return int(max(1, min(tb, cap, T)))


def lstm_layer(x_p, h0_p, c0_p, lp, *, T, Tb, vmem_limit):
    """Single LSTM layer.

    x_p: (Tp, Bp, Kp) f32 time-major, already padded (Kp % 128 == 0).
    h0_p/c0_p: (Bp, Hp) f32.  Returns padded h_seq (Tp, Bp, Hp), h_n, c_n.
    """
    Tp, Bp, Kp = x_p.shape
    Hp = lp["w_hh_t"].shape[0]

    # Hoisted input projection: one big tiled bf16 MXU matmul over all timesteps.
    # x_p is pre-padded, the weights are pre-padded at init, so the reshape is free.
    gx = matmul_bias(x_p.reshape(Tp * Bp, Kp), lp["w_ih_t"], lp["bias"],
                     vmem_limit=vmem_limit)
    gx = gx.reshape(Tp, Bp, 4 * Hp)

    n_blk = Tp // Tb
    last_steps = T - (n_blk - 1) * Tb   # == Tb when T % Tb == 0

    kernel = functools.partial(_lstm_recurrence_kernel,
                               tb_steps=Tb, last_steps=last_steps)

    out_shapes = (
        jax.ShapeDtypeStruct((Tp, Bp, Hp), jnp.float32),   # h_seq
        jax.ShapeDtypeStruct((Bp, Hp), jnp.float32),       # h_n
        jax.ShapeDtypeStruct((Bp, Hp), jnp.float32),       # c_n
    )
    grid_spec = pltpu.PrefetchScalarGridSpec(
        num_scalar_prefetch=0,
        grid=(n_blk,),
        in_specs=[
            pl.BlockSpec((Tb, Bp, 4 * Hp), lambda t: (t, 0, 0)),
            pl.BlockSpec((Bp, Hp), lambda t: (0, 0)),
            pl.BlockSpec((Bp, Hp), lambda t: (0, 0)),
            pl.BlockSpec((Hp, 4 * Hp), lambda t: (0, 0)),
        ],
        out_specs=[
            pl.BlockSpec((Tb, Bp, Hp), lambda t: (t, 0, 0)),
            pl.BlockSpec((Bp, Hp), lambda t: (0, 0)),
            pl.BlockSpec((Bp, Hp), lambda t: (0, 0)),
        ],
        scratch_shapes=[
            pltpu.VMEM((Bp, Hp), jnp.float32),
            pltpu.VMEM((Bp, Hp), jnp.float32),
        ],
    )
    h_seq_p, h_n_p, c_n_p = pl.pallas_call(
        kernel,
        out_shape=out_shapes,
        grid_spec=grid_spec,
        compiler_params=pltpu.CompilerParams(
            dimension_semantics=("arbitrary",),   # sequential recurrence
            vmem_limit_bytes=vmem_limit,
        ),
    )(gx, h0_p, c0_p, lp["w_hh_t"])
    # TODO(synk): v7x-only further win: add a leading "parallel" batch-block grid
    # axis so the second TensorCore handles half the batch rows of the recurrence.
    return h_seq_p, h_n_p, c_n_p


# ----------------------------------------------------------------------------
# Model parameters: weights pre-transposed, gate-wise padded to lane-aligned
# Hp/Ep/Vp, bias pre-fused, big-matmul weights cast to bf16 — all ONCE at init.
# ----------------------------------------------------------------------------
def init_params(key, vocab_size, emb_size=128, num_layers=1, hidden_size=256):
    H, Hp = hidden_size, _round_up(hidden_size, 128)
    E, Ep = emb_size, _round_up(emb_size, 128)
    V, Vp = vocab_size, _round_up(vocab_size, 512)

    keys = jax.random.split(key, 3 + 4 * num_layers)
    emb = 0.1 * jax.random.normal(keys[0], (V, E), jnp.float32)
    params = {
        "dims": {"V": V, "Vp": Vp, "E": E, "Ep": Ep, "H": H, "Hp": Hp,
                 "L": num_layers},
        "emb": _pad_to(emb, (V, Ep)),      # padded emb cols are zero
        "lstm": [],
    }
    kidx = 1
    for layer in range(num_layers):
        in_sz = E if layer == 0 else H
        Kp = Ep if layer == 0 else Hp
        w_ih = 0.1 * jax.random.normal(keys[kidx], (4 * H, in_sz), jnp.float32)
        w_hh = 0.1 * jax.random.normal(keys[kidx + 1], (4 * H, H), jnp.float32)
        b_ih = 0.1 * jax.random.normal(keys[kidx + 2], (4 * H,), jnp.float32)
        b_hh = 0.1 * jax.random.normal(keys[kidx + 3], (4 * H,), jnp.float32)
        kidx += 4
        w_ih_t = _pad_to(_pad_gate_cols(w_ih.T, H, Hp), (Kp, 4 * Hp))
        w_hh_t = _pad_to(_pad_gate_cols(w_hh.T, H, Hp), (Hp, 4 * Hp))
        bias = _pad_gate_cols((b_ih + b_hh).reshape(1, 4 * H), H, Hp)
        params["lstm"].append({
            "w_ih_t": w_ih_t.astype(jnp.bfloat16),   # bf16 MXU input projection
            "w_hh_t": w_hh_t,                          # f32: serial recurrence matmul
            "bias": bias,                              # (1, 4Hp) f32
        })
    logits_w = 0.1 * jax.random.normal(keys[-2], (V, H), jnp.float32)
    logits_b = 0.1 * jax.random.normal(keys[-1], (V,), jnp.float32)
    params["logits_w_t"] = _pad_to(logits_w.T, (Hp, Vp)).astype(jnp.bfloat16)
    params["logits_b"] = _pad_to(logits_b.reshape(1, V), (1, Vp))
    return params


# ----------------------------------------------------------------------------
# Forward pass (mirrors the PyTorch module semantics)
# ----------------------------------------------------------------------------
def model_forward(params, x_ids, hx=None):
    """x_ids: (B, T) int32 token ids.  Returns (logits (B,T,V), (h_n, c_n))."""
    d = params["dims"]
    B, T = x_ids.shape
    H, Hp, V, Vp, L = d["H"], d["Hp"], d["V"], d["Vp"], d["L"]
    Bp = _round_up(B, 8)
    vlimit = _vmem_limit_bytes()
    Tb = _choose_time_block(T, Bp, Hp, int(vlimit * 0.8))
    Tp = _round_up(T, Tb)

    # Embedding gather (pure data movement -> plain JAX glue); emb is pre-padded
    # so the layer-0 input is already lane-aligned.  Pad time/batch once.
    x_emb = params["emb"][x_ids]                    # (B, T, Ep)
    x_tm = jnp.transpose(x_emb, (1, 0, 2))          # (T, B, Ep) time-major
    layer_in = _pad_to(x_tm, (Tp, Bp, x_tm.shape[-1]))

    if hx is None:
        h0_all = jnp.zeros((L, B, H), jnp.float32)
        c0_all = jnp.zeros((L, B, H), jnp.float32)
    else:
        h0_all, c0_all = hx

    h_n_list, c_n_list = [], []
    for layer, lp in enumerate(params["lstm"]):
        h0_p = _pad_to(h0_all[layer].astype(jnp.float32), (Bp, Hp))
        c0_p = _pad_to(c0_all[layer].astype(jnp.float32), (Bp, Hp))
        layer_in, h_n_p, c_n_p = lstm_layer(layer_in, h0_p, c0_p, lp,
                                            T=T, Tb=Tb, vmem_limit=vlimit)
        h_n_list.append(h_n_p[:B, :H])
        c_n_list.append(c_n_p[:B, :H])
        # TODO(synk): inter-layer dropout (train-mode only) not implemented;
        # module default dropout=0.0 so inference semantics are exact.

    lstm_out = jnp.transpose(layer_in[:T, :B, :], (1, 0, 2))   # (B, T, Hp)
    logits_flat = matmul_bias(lstm_out.reshape(B * T, Hp),
                              params["logits_w_t"], params["logits_b"],
                              vmem_limit=vlimit)               # (B*T, Vp)
    if Vp != V:
        logits_flat = logits_flat[:, :V]
    logits = logits_flat.reshape(B, T, V)
    return logits, (jnp.stack(h_n_list, axis=0), jnp.stack(c_n_list, axis=0))


# ----------------------------------------------------------------------------
# Pure-JAX f32 reference (numerical sanity check; uses the same padded weights)
# ----------------------------------------------------------------------------
def model_forward_ref(params, x_ids, hx=None):
    d = params["dims"]
    B, T = x_ids.shape
    H, Hp, V, L = d["H"], d["Hp"], d["V"], d["L"]
    x_emb = params["emb"][x_ids]
    layer_in = jnp.transpose(x_emb, (1, 0, 2))
    if hx is None:
        h0_all = jnp.zeros((L, B, Hp), jnp.float32)
        c0_all = jnp.zeros((L, B, Hp), jnp.float32)
    else:
        h0, c0 = hx
        h0_all = jnp.zeros((L, B, Hp), jnp.float32).at[:, :, :H].set(h0)
        c0_all = jnp.zeros((L, B, Hp), jnp.float32).at[:, :, :H].set(c0)
    h_n_list, c_n_list = [], []
    for layer, lp in enumerate(params["lstm"]):
        w_ih_t = lp["w_ih_t"].astype(jnp.float32)
        w_hh_t = lp["w_hh_t"].astype(jnp.float32)
        bias = lp["bias"].astype(jnp.float32)

        def step(carry, x_t, w_ih_t=w_ih_t, w_hh_t=w_hh_t, bias=bias):
            h, c = carry
            gates = x_t @ w_ih_t + h @ w_hh_t + bias
            i = jax.nn.sigmoid(gates[:, 0 * Hp:1 * Hp])
            f = jax.nn.sigmoid(gates[:, 1 * Hp:2 * Hp])
            g = jnp.tanh(gates[:, 2 * Hp:3 * Hp])
            o = jax.nn.sigmoid(gates[:, 3 * Hp:4 * Hp])
            c_new = f * c + i * g
            h_new = o * jnp.tanh(c_new)
            return (h_new, c_new), h_new

        (h_n, c_n), h_seq = lax.scan(
            step, (h0_all[layer], c0_all[layer]), layer_in)
        layer_in = h_seq
        h_n_list.append(h_n[:, :H])
        c_n_list.append(c_n[:, :H])
    lstm_out = jnp.transpose(layer_in, (1, 0, 2))
    logits = lstm_out @ params["logits_w_t"].astype(jnp.float32) + params["logits_b"]
    logits = logits[:, :, :V]
    return logits, (jnp.stack(h_n_list), jnp.stack(c_n_list))


if __name__ == "__main__":
    # Small, module-consistent shapes.
    vocab_size, emb_size, hidden_size, num_layers = 64, 32, 32, 2
    B, T = 2, 8

    key = jax.random.PRNGKey(0)
    pkey, xkey = jax.random.split(key)
    params = init_params(pkey, vocab_size, emb_size, num_layers, hidden_size)
    x_ids = jax.random.randint(xkey, (B, T), 0, vocab_size, dtype=jnp.int32)

    logits, (h_n, c_n) = model_forward(params, x_ids)
    jax.block_until_ready((logits, h_n, c_n))

    assert logits.shape == (B, T, vocab_size)
    assert h_n.shape == (num_layers, B, hidden_size)
    assert c_n.shape == (num_layers, B, hidden_size)

    # Numerical sanity check against the pure-JAX f32 reference (bf16 matmuls in
    # the Pallas path -> looser tolerance than a pure-f32 comparison).
    ref_logits, (ref_h, ref_c) = model_forward_ref(params, x_ids)
    assert jnp.allclose(logits, ref_logits, atol=1e-2, rtol=1e-2)
    assert jnp.allclose(h_n, ref_h, atol=1e-2, rtol=1e-2)
    assert jnp.allclose(c_n, ref_c, atol=1e-2, rtol=1e-2)

    print("KERNEL_OK")
</pallas_src>

<mosaic_0001>
module attributes {stable_mosaic.version = 11 : i64} {
  func.func @_matmul_bias_kernel(%arg0: i32, %arg1: i32, %arg2: i32, %arg3: memref<64x128xf32, #tpu.memory_space<vmem>>, %arg4: memref<128x512xbf16, #tpu.memory_space<vmem>>, %arg5: memref<1x512xf32, #tpu.memory_space<vmem>>, %arg6: memref<64x512xf32, #tpu.memory_space<vmem>>, %arg7: memref<64x512xf32, #tpu.memory_space<vmem>>) attributes {dimension_semantics = [#tpu.dimension_semantics<parallel>, #tpu.dimension_semantics<parallel>, #tpu.dimension_semantics<arbitrary>], iteration_bounds = array<i64: 1, 1, 1>, scalar_prefetch = 0 : i64, scratch_operands = 1 : i64, tpu.core_type = #tpu.core_type<tc>, window_params = [{transform_indices = @transform_0, window_bounds = array<i64: 64, 128>}, {transform_indices = @transform_1, window_bounds = array<i64: 128, 512>}, {transform_indices = @transform_2, window_bounds = array<i64: 1, 512>}, {transform_indices = @transform_3, window_bounds = array<i64: 64, 512>}]} {
    %c0_i32 = arith.constant 0 : i32
    %0 = arith.cmpi eq, %arg2, %c0_i32 : i32
    %1 = arith.extui %0 : i1 to i32
    %c0_i32_0 = arith.constant 0 : i32
    %2 = arith.cmpi ne, %1, %c0_i32_0 : i32
    scf.if %2 {
      %cst_10 = arith.constant 0.000000e+00 : f32
      %13 = vector.broadcast %cst_10 : f32 to vector<64x512xf32>
      %c0_11 = arith.constant 0 : index
      %c0_12 = arith.constant 0 : index
      %14 = vector.load %arg7[%c0_11, %c0_12] : memref<64x512xf32, #tpu.memory_space<vmem>>, vector<64x512xf32>
      tpu.vector_store %arg7[%c0_11, %c0_12], %13 {strides = array<i32>} : memref<64x512xf32, #tpu.memory_space<vmem>>, vector<64x512xf32>,
    } else {
    }
    %c0 = arith.constant 0 : index
    %c0_1 = arith.constant 0 : index
    %3 = vector.load %arg7[%c0, %c0_1] : memref<64x512xf32, #tpu.memory_space<vmem>>, vector<64x512xf32>
    %c0_2 = arith.constant 0 : index
    %c0_3 = arith.constant 0 : index
    %4 = vector.load %arg3[%c0_2, %c0_3] : memref<64x128xf32, #tpu.memory_space<vmem>>, vector<64x128xf32>
    %5 = arith.truncf %4 : vector<64x128xf32> to vector<64x128xbf16>
    %c0_4 = arith.constant 0 : index
    %c0_5 = arith.constant 0 : index
    %6 = vector.load %arg4[%c0_4, %c0_5] : memref<128x512xbf16, #tpu.memory_space<vmem>>, vector<128x512xbf16>
    %cst = arith.constant dense<0.000000e+00> : vector<64x512xf32>
    %7 = tpu.matmul %5, %6, %cst {dimension_numbers = #tpu.dot_dimension_numbers<[1], [0], [0], [1], [0, 0, 1, 1], [], []>} : vector<64x128xbf16>, vector<128x512xbf16>, vector<64x512xf32> -> vector<64x512xf32>
    %8 = arith.addf %3, %7 : vector<64x512xf32>
    %c0_6 = arith.constant 0 : index
    %c0_7 = arith.constant 0 : index
    %9 = vector.load %arg7[%c0_6, %c0_7] : memref<64x512xf32, #tpu.memory_space<vmem>>, vector<64x512xf32>
    tpu.vector_store %arg7[%c0_6, %c0_7], %8 {strides = array<i32>} : memref<64x512xf32, #tpu.memory_space<vmem>>, vector<64x512xf32>,
    %c0_i32_8 = arith.constant 0 : i32
    %10 = arith.cmpi eq, %arg2, %c0_i32_8 : i32
    %11 = arith.extui %10 : i1 to i32
    %c0_i32_9 = arith.constant 0 : i32
    %12 = arith.cmpi ne, %11, %c0_i32_9 : i32
    scf.if %12 {
      %c0_10 = arith.constant 0 : index
      %c0_11 = arith.constant 0 : index
      %13 = vector.load %arg7[%c0_10, %c0_11] : memref<64x512xf32, #tpu.memory_space<vmem>>, vector<64x512xf32>
      %c0_12 = arith.constant 0 : index
      %c0_13 = arith.constant 0 : index
      %14 = vector.load %arg5[%c0_12, %c0_13] : memref<1x512xf32, #tpu.memory_space<vmem>>, vector<1x512xf32>
      %15 = vector.broadcast %14 : vector<1x512xf32> to vector<64x512xf32>
      %16 = arith.addf %13, %15 : vector<64x512xf32>
      %c0_14 = arith.constant 0 : index
      %c0_15 = arith.constant 0 : index
      %17 = vector.load %arg6[%c0_14, %c0_15] : memref<64x512xf32, #tpu.memory_space<vmem>>, vector<64x512xf32>
      tpu.vector_store %arg6[%c0_14, %c0_15], %16 {strides = array<i32>} : memref<64x512xf32, #tpu.memory_space<vmem>>, vector<64x512xf32>,
    } else {
    }
    return
  }
  func.func @transform_0(%arg0: i32, %arg1: i32, %arg2: i32) -> (i32, i32) {
    %c0_i32 = arith.constant 0 : i32
    return %arg0, %arg2 : i32, i32
  }
  func.func @transform_1(%arg0: i32, %arg1: i32, %arg2: i32) -> (i32, i32) {
    %c0_i32 = arith.constant 0 : i32
    return %arg2, %arg1 : i32, i32
  }
  func.func @transform_2(%arg0: i32, %arg1: i32, %arg2: i32) -> (i32, i32) {
    %c0_i32 = arith.constant 0 : i32
    %c0_i32_0 = arith.constant 0 : i32
    return %c0_i32, %arg1 : i32, i32
  }
  func.func @transform_3(%arg0: i32, %arg1: i32, %arg2: i32) -> (i32, i32) {
    %c0_i32 = arith.constant 0 : i32
    return %arg0, %arg1 : i32, i32
  }
}

</mosaic_0001>

<bundles_post_ra>
// kernel: tpu_custom_call.1
= control target key start
LH: loop header
LB: loop body
LE: loop exit
PB: predicated region body
PF: predicated region fallthrough
CT: control target
= control target key end

     0   :  { %8 = vsyncpa [#allocation4], 0  ;;  %s995_s0 = inlined_call_operand.hbm [shape: f32[64,128], index: 0, kind: input, shape index: {}]   ;;  %s996_s1 = inlined_call_operand.hbm [shape: bf16[128,512], index: 1, kind: input, shape index: {}]   ;;  %s997_s2 = inlined_call_operand.hbm [shape: f32[1,512], index: 2, kind: input, shape index: {}]   ;;  %s998_s3 = inlined_call_operand.hbm [shape: f32[64,512], index: 3, kind: output, shape index: {}]  }
   0x1   :  { %9 = vsyncpa [#allocation7], 0  ;;  %s28_s14 = sshll.u32 %s996_s1, 4  ;;  %s29_s14 = int_to_ptr.hbm [resolvable:$true] %s28_s14 }
   0x2   :  { %10 = vsyncpa [#allocation5], 0  ;;  %s913_s15 = smov [#allocation6]   ;;  %s15_s19 = sshll.u32 %s995_s0, 4  ;;  %s16_s19 = int_to_ptr.hbm [resolvable:$true] %s15_s19 }
   0x3   :  { %s30_s16 = sshll.u32 %s913_s15, 4  ;;  %s914_s20 = smov 256   ;;  %s31_s16 = int_to_ptr.vmem [resolvable:$true] %s30_s16 }
   0x4   :  { %s915_s21 = smov 16   ;;  %s916_s22 = smov [#allocation3]  }
   0x5   :  { %36 = dma.hbm_to_vmem [thread:$0]  %s29_s14, 4096, %s31_s16, [#allocation7], %s914_s20, %s914_s20, %s915_s21  }
   0x6   :  { %s17_s23 = sshll.u32 %s916_s22, 4  ;;  %s917_s24 = smov 128   ;;  %s18_s23 = int_to_ptr.vmem [resolvable:$true] %s17_s23 }
   0x7   :  { %s918_s25 = smov 8   ;;  %s42_s27 = sshll.u32 %s997_s2, 4  ;;  %s43_s27 = int_to_ptr.hbm [resolvable:$true] %s42_s27 }
   0x8   :  { %23 = dma.hbm_to_vmem [thread:$0]  %s16_s19, 1024, %s18_s23, [#allocation4], %s917_s24, %s917_s24, %s918_s25  }
   0x9   :  { %s919_s28 = smov [#allocation8]  }
   0xa   :  { %s44_s29 = sshll.u32 %s919_s28, 4  ;;  %s45_s29 = int_to_ptr.vmem [resolvable:$true] %s44_s29 }
   0xb   :  { %47 = dma.hbm_to_vmem [thread:$0]  %s43_s27, 64, %s45_s29, [#allocation7]  }
   0xc   :  { %907 = dma.done.wait [#allocation4], 1024  }
   0xd   :  { %908 = vsyncadd [#allocation4], 4294966272 }
   0xe   :  { %909 = dma.done.wait [#allocation7], 4160  }
   0xf   :  { %910 = vsyncadd [#allocation7], 4294963136  ;;  %v755_v0 = vld [vmem:[#allocation6 + $0xe0] sm:$0xf]  ;;  %v799_v1 = vld [vmem:[#allocation6 + $0xec] sm:$0xf0] }
  0x10   :  { %v797_v2 = vld [vmem:[#allocation6 + $0xe4] sm:$0xf]  ;;  %v756_v3 = vor.u32 %v799_v1, %v755_v0  ;;  %v757_v4 = vld [vmem:[#allocation6 + $0xf0] sm:$0xf0]  ;;  %v763_v5 = vld [vmem:[#allocation6 + $0xe8] sm:$0xf] }
  0x11   :  { %v800_v6 = vld [vmem:[#allocation6 + $0xf4] sm:$0xf0]  ;;  %v760_v7 = vor.u32 %v797_v2, %v757_v4  ;;  %v798_v9 = vld [vmem:[#allocation6 + $0xec] sm:$0xf]  ;;  %v765_v10 = vld [vmem:[#allocation6 + $0xf8] sm:$0xf0] }
  0x12   :  { %v764_v8 = vor.u32 %v800_v6, %v763_v5  ;;  %v739_v11 = vld [vmem:[#allocation6 + $0xc0] sm:$0xf]  ;;  %332 = vmatpush.bf16.msra.mxu0 %v756_v3  ;;  %v768_v12 = vor.u32 %v798_v9, %v765_v10  ;;  %v795_v13 = vld [vmem:[#allocation6 + $0xcc] sm:$0xf0]  ;;  %v793_v14 = vld [vmem:[#allocation6 + $0xc4] sm:$0xf] }
  0x13   :  { %v741_v15 = vld [vmem:[#allocation6 + $0xd0] sm:$0xf0]  ;;  %361 = vmatpush.bf16.msra.mxu1 %v760_v7  ;;  %v740_v16 = vor.u32 %v795_v13, %v739_v11  ;;  %v747_v18 = vld [vmem:[#allocation6 + $0xc8] sm:$0xf]  ;;  %v796_v19 = vld [vmem:[#allocation6 + $0xd4] sm:$0xf0] }
  0x14   :  { %390 = vmatpush.bf16.msra.mxu2 %v764_v8  ;;  %v744_v17 = vor.u32 %v793_v14, %v741_v15  ;;  %v794_v20 = vld [vmem:[#allocation6 + $0xcc] sm:$0xf]  ;;  %419 = vmatpush.bf16.msra.mxu3 %v768_v12  ;;  %v748_v21 = vor.u32 %v796_v19, %v747_v18  ;;  %v749_v22 = vld [vmem:[#allocation6 + $0xd8] sm:$0xf0]  ;;  %v723_v23 = vld [vmem:[#allocation6 + $0xa0] sm:$0xf] }
  0x15   :  { %v791_v24 = vld [vmem:[#allocation6 + $0xac] sm:$0xf0]  ;;  %v752_v25 = vor.u32 %v794_v20, %v749_v22  ;;  %v789_v26 = vld [vmem:[#allocation6 + $0xa4] sm:$0xf]  ;;  %v725_v27 = vld [vmem:[#allocation6 + $0xb0] sm:$0xf0] }
  0x16   :  { %v731_v28 = vld [vmem:[#allocation6 + $0xa8] sm:$0xf]  ;;  %333 = vmatpush.bf16.msra.mxu0 %v740_v16  ;;  %v724_v29 = vor.u32 %v791_v24, %v723_v23  ;;  %v792_v30 = vld [vmem:[#allocation6 + $0xb4] sm:$0xf0]  ;;  %v790_v31 = vld [vmem:[#allocation6 + $0xac] sm:$0xf]  ;;  %v728_v33 = vor.u32 %v789_v26, %v725_v27 }
  0x17   :  { %v733_v32 = vld [vmem:[#allocation6 + $0xb8] sm:$0xf0]  ;;  %362 = vmatpush.bf16.msra.mxu1 %v744_v17  ;;  %v732_v34 = vor.u32 %v792_v30, %v731_v28  ;;  %v707_v35 = vld [vmem:[#allocation6 + $0x80] sm:$0xf]  ;;  %v787_v36 = vld [vmem:[#allocation6 + $0x8c] sm:$0xf0] }
  0x18   :  { %391 = vmatpush.bf16.msra.mxu2 %v748_v21  ;;  %v785_v37 = vld [vmem:[#allocation6 + $0x84] sm:$0xf]  ;;  %420 = vmatpush.bf16.msra.mxu3 %v752_v25  ;;  %v736_v38 = vor.u32 %v790_v31, %v733_v32  ;;  %v709_v39 = vld [vmem:[#allocation6 + $0x90] sm:$0xf0]  ;;  %v715_v40 = vld [vmem:[#allocation6 + $0x88] sm:$0xf]  ;;  %v708_v44 = vor.u32 %v787_v36, %v707_v35 }
  0x19   :  { %v788_v41 = vld [vmem:[#allocation6 + $0x94] sm:$0xf0]  ;;  %v786_v42 = vld [vmem:[#allocation6 + $0x8c] sm:$0xf]  ;;  %v717_v43 = vld [vmem:[#allocation6 + $0x98] sm:$0xf0]  ;;  %v712_v45 = vor.u32 %v785_v37, %v709_v39 }
  0x1a   :  { %334 = vmatpush.bf16.msra.mxu0 %v724_v29  ;;  %v716_v46 = vor.u32 %v788_v41, %v715_v40  ;;  %v691_v47 = vld [vmem:[#allocation6 + $0x60] sm:$0xf]  ;;  %v783_v48 = vld [vmem:[#allocation6 + $0x6c] sm:$0xf0]  ;;  %v781_v49 = vld [vmem:[#allocation6 + $0x64] sm:$0xf]  ;;  %v720_v50 = vor.u32 %v786_v42, %v717_v43 }
  0x1b   :  { %363 = vmatpush.bf16.msra.mxu1 %v728_v33  ;;  %v693_v51 = vld [vmem:[#allocation6 + $0x70] sm:$0xf0]  ;;  %v699_v52 = vld [vmem:[#allocation6 + $0x68] sm:$0xf]  ;;  %v784_v53 = vld [vmem:[#allocation6 + $0x74] sm:$0xf0]  ;;  %v692_v56 = vor.u32 %v783_v48, %v691_v47 }
  0x1c   :  { %392 = vmatpush.bf16.msra.mxu2 %v732_v34  ;;  %421 = vmatpush.bf16.msra.mxu3 %v736_v38  ;;  %v782_v54 = vld [vmem:[#allocation6 + $0x6c] sm:$0xf]  ;;  %v701_v55 = vld [vmem:[#allocation6 + $0x78] sm:$0xf0]  ;;  %v696_v57 = vor.u32 %v781_v49, %v693_v51  ;;  %v700_v58 = vor.u32 %v784_v53, %v699_v52  ;;  %v675_v59 = vld [vmem:[#allocation6 + $0x40] sm:$0xf] }
  0x1d   :  { %v779_v60 = vld [vmem:[#allocation6 + $0x4c] sm:$0xf0]  ;;  %v777_v61 = vld [vmem:[#allocation6 + $0x44] sm:$0xf]  ;;  %v704_v62 = vor.u32 %v782_v54, %v701_v55  ;;  %v677_v63 = vld [vmem:[#allocation6 + $0x50] sm:$0xf0] }
  0x1e   :  { %335 = vmatpush.bf16.msra.mxu0 %v708_v44  ;;  %v683_v0 = vld [vmem:[#allocation6 + $0x48] sm:$0xf]  ;;  %v780_v1 = vld [vmem:[#allocation6 + $0x54] sm:$0xf0]  ;;  %v778_v2 = vld [vmem:[#allocation6 + $0x4c] sm:$0xf]  ;;  %v676_v4 = vor.u32 %v779_v60, %v675_v59  ;;  %v680_v5 = vor.u32 %v777_v61, %v677_v63 }
  0x1f   :  { %364 = vmatpush.bf16.msra.mxu1 %v712_v45  ;;  %v685_v3 = vld [vmem:[#allocation6 + $0x58] sm:$0xf0]  ;;  %v684_v6 = vor.u32 %v780_v1, %v683_v0  ;;  %v659_v7 = vld [vmem:[#allocation6 + $0x20] sm:$0xf]  ;;  %v775_v8 = vld [vmem:[#allocation6 + $0x2c] sm:$0xf0] }
  0x20   :  { %393 = vmatpush.bf16.msra.mxu2 %v716_v46  ;;  %422 = vmatpush.bf16.msra.mxu3 %v720_v50  ;;  %v773_v9 = vld [vmem:[#allocation6 + $0x24] sm:$0xf]  ;;  %v688_v10 = vor.u32 %v778_v2, %v685_v3  ;;  %v661_v11 = vld [vmem:[#allocation6 + $0x30] sm:$0xf0]  ;;  %v667_v12 = vld [vmem:[#allocation6 + $0x28] sm:$0xf]  ;;  %v660_v16 = vor.u32 %v775_v8, %v659_v7 }
  0x21   :  { %v776_v13 = vld [vmem:[#allocation6 + $0x34] sm:$0xf0]  ;;  %v774_v14 = vld [vmem:[#allocation6 + $0x2c] sm:$0xf]  ;;  %v669_v15 = vld [vmem:[#allocation6 + $0x38] sm:$0xf0]  ;;  %v664_v17 = vor.u32 %v773_v9, %v661_v11 }
  0x22   :  { %336 = vmatpush.bf16.msra.mxu0 %v692_v56  ;;  %v668_v18 = vor.u32 %v776_v13, %v667_v12  ;;  %v643_v19 = vld [vmem:[#allocation6] sm:$0xf]  ;;  %v771_v20 = vld [vmem:[#allocation6 + $0xc] sm:$0xf0]  ;;  %v769_v21 = vld [vmem:[#allocation6 + $0x4] sm:$0xf]  ;;  %v672_v22 = vor.u32 %v774_v14, %v669_v15 }
  0x23   :  { %365 = vmatpush.bf16.msra.mxu1 %v696_v57  ;;  %v645_v23 = vld [vmem:[#allocation6 + $0x10] sm:$0xf0]  ;;  %v651_v24 = vld [vmem:[#allocation6 + $0x8] sm:$0xf]  ;;  %v772_v25 = vld [vmem:[#allocation6 + $0x14] sm:$0xf0]  ;;  %v644_v28 = vor.u32 %v771_v20, %v643_v19 }
  0x24   :  { %394 = vmatpush.bf16.msra.mxu2 %v700_v58  ;;  %423 = vmatpush.bf16.msra.mxu3 %v704_v62  ;;  %v770_v26 = vld [vmem:[#allocation6 + $0xc] sm:$0xf]  ;;  %v653_v27 = vld [vmem:[#allocation6 + $0x18] sm:$0xf0]  ;;  %v128_v29 = vld [vmem:[#allocation3] sm:$0xff]  ;;  %v648_v31 = vor.u32 %v769_v21, %v645_v23  ;;  %v652_v32 = vor.u32 %v772_v25, %v651_v24  ;;  %s920_s0 = smov [#allocation9]  }
  0x25   :  { %v129_v30 = vld [vmem:[#allocation3 + $0x8] sm:$0xff]  ;;  %v656_v33 = vor.u32 %v770_v26, %v653_v27  ;;  %v130_v35 = vld [vmem:[#allocation3 + $0x10] sm:$0xff]  ;;  %v131_v36 = vld [vmem:[#allocation3 + $0x18] sm:$0xff]  ;;  %s625_s2 = sshll.u32 %s920_s0, 4  ;;  %s627_s5 = sshll.u32 %s998_s3, 4  ;;  %s626_s2 = int_to_ptr.vmem [resolvable:$true] %s625_s2  ;;  %s628_s5 = int_to_ptr.hbm [resolvable:$true] %s627_s5 }
  0x26   :  { %337 = vmatpush.bf16.msra.mxu0 %v676_v4  ;;  %v136_v34 = vpack.c.bf16 %v129_v30, %v128_v29  ;;  %v137_v37 = vpack.c.bf16 %v131_v36, %v130_v35  ;;  %v132_v38 = vld [vmem:[#allocation3 + $0x20] sm:$0xff]  ;;  %v133_v39 = vld [vmem:[#allocation3 + $0x28] sm:$0xff]  ;;  %v134_v41 = vld [vmem:[#allocation3 + $0x30] sm:$0xff]  ;;  %s921_s6 = smov 512   ;;  %s922_s7 = smov 32  }
  0x27   :  { %366 = vmatpush.bf16.msra.mxu1 %v680_v5  ;;  %v138_v40 = vpack.c.bf16 %v133_v39, %v132_v38  ;;  %v135_v42 = vld [vmem:[#allocation3 + $0x38] sm:$0xff]  ;;  %v547_v44 = vld [vmem:[#allocation8] sm:$0xf] }
  0x28   :  { %395 = vmatpush.bf16.msra.mxu2 %v684_v6  ;;  %424 = vmatpush.bf16.msra.mxu3 %v688_v10  ;;  %v139_v43 = vpack.c.bf16 %v135_v42, %v134_v41  ;;  %v952_v45 = vperm.slane %v547_v44, 0  ;;  %v954_v46 = vperm.slane %v547_v44, 1  ;;  %v958_v51 = vperm.slane %v547_v44, 2 }
  0x29   :  { %v960_v52 = vperm.slane %v547_v44, 3 }
  0x2a   :  { %338 = vmatpush.bf16.msra.mxu0 %v660_v16 }
  0x2b   :  { %367 = vmatpush.bf16.msra.mxu1 %v664_v17 }
  0x2c   :  { %396 = vmatpush.bf16.msra.mxu2 %v668_v18  ;;  %425 = vmatpush.bf16.msra.mxu3 %v672_v22 }
  0x2e   :  { %339 = vmatpush.bf16.msra.mxu0 %v644_v28 }
  0x2f   :  { %368 = vmatpush.bf16.msra.mxu1 %v648_v31 }
  0x30   :  { %397 = vmatpush.bf16.msra.mxu2 %v652_v32  ;;  %426 = vmatpush.bf16.msra.mxu3 %v656_v33 }
  0x31   :  { %340 = vmatmul.bf16.vlgmr.msra.gmra.mxu0 %v136_v34 }
  0x32   :  { %369 = vmatmul.bf16.vlgmr.msra.gmra.mxu1 %v136_v34 }
  0x33   :  { %398 = vmatmul.bf16.vlgmr.msra.gmra.mxu2 %v136_v34  ;;  %427 = vmatmul.bf16.vlgmr.msra.gmra.mxu3 %v136_v34 }
  0x41   :  { %345 = vmatmul.bf16.gmra.mxu0 %v137_v37 }
  0x42   :  { %374 = vmatmul.bf16.gmra.mxu1 %v137_v37 }
  0x43   :  { %403 = vmatmul.bf16.gmra.mxu2 %v137_v37  ;;  %432 = vmatmul.bf16.gmra.mxu3 %v137_v37 }
  0x51   :  { %350 = vmatmul.bf16.gmra.mxu0 %v138_v40 }
  0x52   :  { %379 = vmatmul.bf16.gmra.mxu1 %v138_v40 }
  0x53   :  { %408 = vmatmul.bf16.gmra.mxu2 %v138_v40  ;;  %437 = vmatmul.bf16.gmra.mxu3 %v138_v40 }
  0x61   :  { %355 = vmatmul.bf16.gmra.mxu0 %v139_v43 }
  0x62   :  { %384 = vmatmul.bf16.gmra.mxu1 %v139_v43 }
  0x63   :  { %413 = vmatmul.bf16.gmra.mxu2 %v139_v43  ;;  %442 = vmatmul.bf16.gmra.mxu3 %v139_v43 }
  0xae   :  { %v341_v47 = vpop.f32.mrf.mxu0 }
  0xaf   :  { %v557_v48 = vadd.f32 %v952_v45, %v341_v47  ;;  %v370_v49 = vpop.f32.mrf.mxu1 }
  0xb0   :  { %v558_v50 = vadd.f32 %v954_v46, %v370_v49 }
  0xb1   :  { %589 = vst [vmem:[#allocation9] sm:$0xff] %v557_v48 }
  0xb2   :  { %590 = vst [vmem:[#allocation9 + $0x8] sm:$0xff] %v558_v50 }
  0xb6   :  { %v399_v53 = vpop.f32.mrf.mxu2  ;;  %v428_v55 = vpop.f32.mrf.mxu3 }
  0xb7   :  { %v559_v54 = vadd.f32 %v958_v51, %v399_v53  ;;  %v343_v56 = vpop.f32.mrf.mxu0  ;;  %v560_v57 = vadd.f32 %v960_v52, %v428_v55  ;;  %v372_v59 = vpop.f32.mrf.mxu1 }
  0xb8   :  { %v561_v58 = vadd.f32 %v952_v45, %v343_v56  ;;  %v562_v60 = vadd.f32 %v954_v46, %v372_v59 }
  0xb9   :  { %591 = vst [vmem:[#allocation9 + $0x10] sm:$0xff] %v559_v54 }
  0xba   :  { %592 = vst [vmem:[#allocation9 + $0x18] sm:$0xff] %v560_v57 }
  0xbb   :  { %593 = vst [vmem:[#allocation9 + $0x20] sm:$0xff] %v561_v58 }
  0xbc   :  { %594 = vst [vmem:[#allocation9 + $0x28] sm:$0xff] %v562_v60 }
  0xbe   :  { %v401_v61 = vpop.f32.mrf.mxu2  ;;  %v430_v63 = vpop.f32.mrf.mxu3 }
  0xbf   :  { %v563_v62 = vadd.f32 %v958_v51, %v401_v61  ;;  %v346_v0 = vpop.f32.mrf.mxu0  ;;  %v564_v1 = vadd.f32 %v960_v52, %v430_v63  ;;  %v375_v3 = vpop.f32.mrf.mxu1 }
  0xc0   :  { %v565_v2 = vadd.f32 %v952_v45, %v346_v0  ;;  %v566_v4 = vadd.f32 %v954_v46, %v375_v3 }
  0xc1   :  { %595 = vst [vmem:[#allocation9 + $0x30] sm:$0xff] %v563_v62 }
  0xc2   :  { %596 = vst [vmem:[#allocation9 + $0x38] sm:$0xff] %v564_v1 }
  0xc3   :  { %597 = vst [vmem:[#allocation9 + $0x40] sm:$0xff] %v565_v2 }
  0xc4   :  { %598 = vst [vmem:[#allocation9 + $0x48] sm:$0xff] %v566_v4 }
  0xc6   :  { %v404_v5 = vpop.f32.mrf.mxu2  ;;  %v433_v7 = vpop.f32.mrf.mxu3 }
  0xc7   :  { %v567_v6 = vadd.f32 %v958_v51, %v404_v5  ;;  %v348_v8 = vpop.f32.mrf.mxu0  ;;  %v568_v9 = vadd.f32 %v960_v52, %v433_v7  ;;  %v377_v11 = vpop.f32.mrf.mxu1 }
  0xc8   :  { %v569_v10 = vadd.f32 %v952_v45, %v348_v8  ;;  %v570_v12 = vadd.f32 %v954_v46, %v377_v11 }
  0xc9   :  { %599 = vst [vmem:[#allocation9 + $0x50] sm:$0xff] %v567_v6 }
  0xca   :  { %600 = vst [vmem:[#allocation9 + $0x58] sm:$0xff] %v568_v9 }
  0xcb   :  { %601 = vst [vmem:[#allocation9 + $0x60] sm:$0xff] %v569_v10 }
  0xcc   :  { %602 = vst [vmem:[#allocation9 + $0x68] sm:$0xff] %v570_v12 }
  0xce   :  { %v406_v13 = vpop.f32.mrf.mxu2  ;;  %v435_v15 = vpop.f32.mrf.mxu3 }
  0xcf   :  { %v571_v14 = vadd.f32 %v958_v51, %v406_v13  ;;  %v351_v16 = vpop.f32.mrf.mxu0  ;;  %v572_v17 = vadd.f32 %v960_v52, %v435_v15  ;;  %v380_v19 = vpop.f32.mrf.mxu1 }
  0xd0   :  { %v573_v18 = vadd.f32 %v952_v45, %v351_v16  ;;  %v574_v20 = vadd.f32 %v954_v46, %v380_v19 }
  0xd1   :  { %603 = vst [vmem:[#allocation9 + $0x70] sm:$0xff] %v571_v14 }
  0xd2   :  { %604 = vst [vmem:[#allocation9 + $0x78] sm:$0xff] %v572_v17 }
  0xd3   :  { %605 = vst [vmem:[#allocation9 + $0x80] sm:$0xff] %v573_v18 }
  0xd4   :  { %606 = vst [vmem:[#allocation9 + $0x88] sm:$0xff] %v574_v20 }
  0xd6   :  { %v409_v21 = vpop.f32.mrf.mxu2  ;;  %v438_v23 = vpop.f32.mrf.mxu3 }
  0xd7   :  { %v575_v22 = vadd.f32 %v958_v51, %v409_v21  ;;  %v353_v24 = vpop.f32.mrf.mxu0  ;;  %v576_v25 = vadd.f32 %v960_v52, %v438_v23  ;;  %v382_v27 = vpop.f32.mrf.mxu1 }
  0xd8   :  { %v577_v26 = vadd.f32 %v952_v45, %v353_v24  ;;  %v578_v28 = vadd.f32 %v954_v46, %v382_v27 }
  0xd9   :  { %607 = vst [vmem:[#allocation9 + $0x90] sm:$0xff] %v575_v22 }
  0xda   :  { %608 = vst [vmem:[#allocation9 + $0x98] sm:$0xff] %v576_v25 }
  0xdb   :  { %609 = vst [vmem:[#allocation9 + $0xa0] sm:$0xff] %v577_v26 }
  0xdc   :  { %610 = vst [vmem:[#allocation9 + $0xa8] sm:$0xff] %v578_v28 }
  0xde   :  { %v411_v29 = vpop.f32.mrf.mxu2  ;;  %v440_v31 = vpop.f32.mrf.mxu3 }
  0xdf   :  { %v579_v30 = vadd.f32 %v958_v51, %v411_v29  ;;  %v356_v32 = vpop.f32.mrf.mxu0  ;;  %v580_v33 = vadd.f32 %v960_v52, %v440_v31  ;;  %v385_v35 = vpop.f32.mrf.mxu1 }
  0xe0   :  { %v581_v34 = vadd.f32 %v952_v45, %v356_v32  ;;  %v582_v36 = vadd.f32 %v954_v46, %v385_v35 }
  0xe1   :  { %611 = vst [vmem:[#allocation9 + $0xb0] sm:$0xff] %v579_v30 }
  0xe2   :  { %612 = vst [vmem:[#allocation9 + $0xb8] sm:$0xff] %v580_v33 }
  0xe3   :  { %613 = vst [vmem:[#allocation9 + $0xc0] sm:$0xff] %v581_v34 }
  0xe4   :  { %614 = vst [vmem:[#allocation9 + $0xc8] sm:$0xff] %v582_v36 }
  0xe6   :  { %v414_v37 = vpop.f32.mrf.mxu2  ;;  %v443_v39 = vpop.f32.mrf.mxu3 }
  0xe7   :  { %v583_v38 = vadd.f32 %v958_v51, %v414_v37  ;;  %v358_v40 = vpop.f32.mrf.mxu0  ;;  %v584_v41 = vadd.f32 %v960_v52, %v443_v39  ;;  %v387_v43 = vpop.f32.mrf.mxu1 }
  0xe8   :  { %v585_v42 = vadd.f32 %v952_v45, %v358_v40  ;;  %v586_v44 = vadd.f32 %v954_v46, %v387_v43 }
  0xe9   :  { %615 = vst [vmem:[#allocation9 + $0xd0] sm:$0xff] %v583_v38 }
  0xea   :  { %616 = vst [vmem:[#allocation9 + $0xd8] sm:$0xff] %v584_v41 }
  0xeb   :  { %617 = vst [vmem:[#allocation9 + $0xe0] sm:$0xff] %v585_v42 }
  0xec   :  { %618 = vst [vmem:[#allocation9 + $0xe8] sm:$0xff] %v586_v44 }
  0xee   :  { %v416_v47 = vpop.f32.mrf.mxu2  ;;  %v445_v49 = vpop.f32.mrf.mxu3 }
  0xef   :  { %v587_v48 = vadd.f32 %v958_v51, %v416_v47  ;;  %v588_v45 = vadd.f32 %v960_v52, %v445_v49 }
  0xf1   :  { %619 = vst [vmem:[#allocation9 + $0xf0] sm:$0xff] %v587_v48 }
  0xf2   :  { %620 = vst [vmem:[#allocation9 + $0xf8] sm:$0xff] %v588_v45 }
  0xf3   :  { %633 = dma.vmem_to_hbm [thread:$0]  %s626_s2, 4096, %s628_s5, [#allocation5], %s921_s6, %s921_s6, %s922_s7  }
  0xf4   :  { %911 = dma.done.wait [#allocation5], 4096  }
  0xf5   :  { %912 = vsyncadd [#allocation5], 4294963200 }
  0xf6   :  { %638 = vsyncpa [#allocation4], 1 }
  0xf7   :  { %639 = vsyncpa [#allocation7], 1 }
  0xf8   :  { %640 = vsyncpa [#allocation5], 1 }

</bundles_post_ra>
